<compile_context>
chip_gen: v7x
topology: tpu7x:2x2x1
jax: 0.10.0
libtpu: 0.0.40
codegen_flags: <defaults>
</compile_context>

<pallas_src>
import jax
import jax.numpy as jnp
from jax.experimental import pallas as pl
from jax.experimental.pallas import tpu as pltpu


def _gat_edge_kernel(psrc_ref, ptgt_ref, ri_ref, g0_ref, g1_ref,
                     o_ref, acc_ref, m_ref):
    """Edge-tile accumulation; all node-level precompute is done in the wrapper."""
    e = pl.program_id(0)
    HL = o_ref.shape[1]          # H * L
    H = m_ref.shape[1]           # num heads

    @pl.when(e == 0)
    def _init():
        acc_ref[...] = jnp.zeros_like(acc_ref)          # fused [num | den]
        m_ref[...] = jnp.full_like(m_ref, -1e30)        # running per-head max

    ri = ri_ref[...]                                    # (H, HL+H) = [R | I_H]
    # g0 is used twice (target gather + scatter) -> upcast once and reuse.
    # g1 has a single use -> cast inline so the convert can fuse into the dot.
    g0f = g0_ref[...].astype(jnp.float32)               # (TE, N)

    # fused source gather: [h_src | s_src]              (TE, HL+H)
    src = jnp.dot(g1_ref[...].astype(jnp.float32), psrc_ref[...],
                  preferred_element_type=jnp.float32)
    # fused target gather: [s_tgt | valid]              (TE, H+1)
    tgt = jnp.dot(g0f, ptgt_ref[...], preferred_element_type=jnp.float32)

    s_src = src[:, HL:]                                  # (TE, H)
    s_tgt = tgt[:, :H]                                   # (TE, H)
    valid = tgt[:, H:]                                   # (TE, 1): 1 real, 0 padded

    # attention score per (edge, head) + leaky_relu(0.2); mask padded edges
    score = s_tgt + s_src
    score = jnp.where(score >= 0, score, 0.2 * score)
    score = jnp.where(valid > 0.5, score, -1e30)

    # ---- online per-head max for numerically stable exp across tiles ----
    m_tile = jnp.max(score, axis=0, keepdims=True)       # (1, H)
    m_new = jnp.maximum(m_ref[...], m_tile)
    alpha = jnp.exp(m_ref[...] - m_new)                  # (1, H)
    m_ref[...] = m_new

    p = jnp.exp(score - m_new)                            # (TE, H)
    pp = jnp.dot(p, ri, preferred_element_type=jnp.float32)      # (TE, HL+H) = [p_rep | p]
    aa = jnp.dot(alpha, ri, preferred_element_type=jnp.float32)  # (1, HL+H)  = [a_rep | a]

    # payload = [p_rep * h_src | p] via a lane mask (no concatenates)
    lane = jax.lax.broadcasted_iota(jnp.int32, src.shape, 1)
    payload = pp * jnp.where(lane < HL, src, 1.0)         # (TE, HL+H)

    # ---- single fused [num | den] G0^T scatter-accumulate (contract dim 0) ----
    dn = (((0,), (0,)), ((), ()))
    acc_ref[...] = acc_ref[...] * aa + jax.lax.dot_general(
        g0f, payload, dn, preferred_element_type=jnp.float32)     # (N, HL+H)

    # ---- last tile: per-node normalization (guard zero in-degree nodes) ----
    @pl.when(e == pl.num_programs(0) - 1)
    def _finalize():
        acc = acc_ref[...]
        num = acc[:, :HL]                                         # (N, HL)
        den_rep = jnp.dot(acc[:, HL:], ri[:, :HL],
                          preferred_element_type=jnp.float32)     # (N, HL)
        safe = jnp.where(den_rep > 0, den_rep, 1.0)
        o_ref[...] = (num / safe).astype(o_ref.dtype)


def _vmem_capacity_bytes():
    try:
        info = pltpu.get_tpu_info()
        cap = getattr(info, "vmem_capacity_bytes", None)
        if cap:
            return int(cap)
    except Exception:
        pass
    return 64 * 1024 * 1024   # conservative fallback (v7x per-TC)


def gat_layer(x, edges, input_layer, attention_vector, predict=False, e_tile=None):
    """Pallas implementation of GatLayer.forward.

    x:                (N, F) float32
    edges:            (E, 2) int   (column 0 = target / segment index)
    input_layer:      (H, F, L) float32
    attention_vector: (H, 2L) float32
    """
    N, F = x.shape
    H, _, L = input_layer.shape
    E = edges.shape[0]
    HL = H * L

    x = x.astype(jnp.float32)
    W = input_layer.astype(jnp.float32)
    a = attention_vector.astype(jnp.float32)
    a_tgt, a_src = a[:, :L], a[:, L:]

    # ---- node-level precompute hoisted to XLA (small GEMMs) ----
    feats = jnp.einsum('ni,hil->nhl', x, W)                     # (N, H, L)
    s_tgt = jnp.einsum('nhl,hl->nh', feats, a_tgt)              # (N, H)
    s_src = jnp.einsum('nhl,hl->nh', feats, a_src)              # (N, H)
    feats_flat = feats.reshape(N, HL)                           # col h*L+l = h[h,n,l]
    p_src = jnp.concatenate([feats_flat, s_src], axis=1)        # (N, HL+H)
    p_tgt = jnp.concatenate([s_tgt, jnp.ones((N, 1), jnp.float32)], axis=1)  # (N, H+1)

    eye_h = jnp.eye(H, dtype=jnp.float32)
    ri = jnp.concatenate([jnp.repeat(eye_h, L, axis=1), eye_h], axis=1)      # (H, HL+H)

    # ---- per-chip VMEM budget and edge-tile size ----
    vmem_cap = _vmem_capacity_bytes()
    vmem_limit = max(32 << 20, min(int(vmem_cap * 0.85), 112 << 20))
    if e_tile is None:
        # per edge-row bytes: int8 G0/G1 double-buffered DMA (4N) + in-kernel f32
        # upcasts (8N) + narrow 128-lane-padded f32 intermediates (~4 KiB)
        per_row = 12 * N + 4096
        e_tile = (vmem_limit // 2) // per_row
    te = int(max(32, min(int(e_tile), 4096)))
    te = (te // 32) * 32                      # int8 sublane packing: multiple of 32
    e_pad = ((max(E, 1) + te - 1) // te) * te
    n_tiles = e_pad // te

    # padded edges get index -1 -> all-zero one-hot rows (scatter to nothing,
    # and the ones-column gather marks them invalid so scores are masked).
    pad = jnp.full((e_pad - E,), -1, dtype=jnp.int32)
    idx_t = jnp.concatenate([edges[:, 0].astype(jnp.int32), pad])
    idx_s = jnp.concatenate([edges[:, 1].astype(jnp.int32), pad])
    g0 = jax.nn.one_hot(idx_t, N, dtype=jnp.int8)               # (E_pad, N)
    g1 = jax.nn.one_hot(idx_s, N, dtype=jnp.int8)               # (E_pad, N)

    out = pl.pallas_call(
        _gat_edge_kernel,
        out_shape=jax.ShapeDtypeStruct((N, HL), jnp.float32),
        grid_spec=pltpu.PrefetchScalarGridSpec(
            num_scalar_prefetch=0,
            grid=(n_tiles,),
            in_specs=[
                pl.BlockSpec((N, HL + H), lambda e: (0, 0)),    # P_src = [feats | s_src]
                pl.BlockSpec((N, H + 1), lambda e: (0, 0)),     # P_tgt = [s_tgt | 1]
                pl.BlockSpec((H, HL + H), lambda e: (0, 0)),    # RI = [R | I_H]
                pl.BlockSpec((te, N), lambda e: (e, 0)),        # G0 edge tile (int8)
                pl.BlockSpec((te, N), lambda e: (e, 0)),        # G1 edge tile (int8)
            ],
            out_specs=pl.BlockSpec((N, HL), lambda e: (0, 0)),
            scratch_shapes=[
                pltpu.VMEM((N, HL + H), jnp.float32),   # fused [num | den] accumulator
                pltpu.VMEM((1, H), jnp.float32),        # running per-head max
            ],
        ),
        compiler_params=pltpu.CompilerParams(
            dimension_semantics=("arbitrary",),
            vmem_limit_bytes=int(vmem_limit),
        ),
    )(p_src, p_tgt, ri, g0, g1)

    # get_output (glue): kernel output column h*L+l == h[h, n, l]
    if predict:
        return out.reshape(N, H, L).mean(axis=1)                # (N, L)
    return out                                                  # (N, H*L)


def gat_reference(x, edges, W, a, predict=False):
    """Pure-JAX reference mirroring the PyTorch forward."""
    N = x.shape[0]
    h = jnp.einsum('hif,ni->hnf', W, x)                   # (H, N, L)
    he = h[:, edges]                                      # (H, E, 2, L)
    Hn, E, _, L = he.shape
    hc = he.reshape(Hn, E, 2 * L)
    scores = jnp.einsum('hf,hef->he', a, hc)              # (H, E)
    scores = jnp.where(scores >= 0, scores, 0.2 * scores)
    idx = edges[:, 0]
    s = scores.T                                          # (E, H)
    seg_max = jax.ops.segment_max(s, idx, num_segments=N)
    p = jnp.exp(s - seg_max[idx])
    seg_sum = jax.ops.segment_sum(p, idx, num_segments=N)
    att = p / seg_sum[idx]                                # (E, H)
    vals = att[:, :, None] * jnp.transpose(he[:, :, 1], (1, 0, 2))  # (E, H, L)
    out = jax.ops.segment_sum(vals, idx, num_segments=N)  # (N, H, L)
    out = jnp.transpose(out, (1, 0, 2))                   # (H, N, L)
    if predict:
        return out.mean(axis=0)
    return jnp.transpose(out, (1, 0, 2)).reshape(N, Hn * L)


if __name__ == "__main__":
    key = jax.random.PRNGKey(0)
    N, F, L, H = 16, 8, 8, 3
    k1, k2, k3 = jax.random.split(key, 3)

    x = jax.random.normal(k1, (N, F), dtype=jnp.float32)
    # parameters: torch.rand -> uniform [0, 1)
    W = jax.random.uniform(k2, (H, F, L), dtype=jnp.float32)
    a = jax.random.uniform(k3, (H, 2 * L), dtype=jnp.float32)

    # deterministic edges: self-loops + two forward rings + reverse ring
    nodes = jnp.arange(N, dtype=jnp.int32)
    edges = jnp.concatenate([
        jnp.stack([nodes, nodes], axis=1),
        jnp.stack([nodes, (nodes + 1) % N], axis=1),
        jnp.stack([nodes, (nodes + 2) % N], axis=1),
        jnp.stack([(nodes + 1) % N, nodes], axis=1),
    ], axis=0)                                            # (64, 2)

    ref = gat_reference(x, edges, W, a, predict=False)

    # multi-tile path (two 32-edge tiles): exercises online-max accumulation
    out = jax.block_until_ready(gat_layer(x, edges, W, a, predict=False, e_tile=32))
    assert out.shape == (N, H * L)
    assert jnp.allclose(out, ref, atol=1e-4, rtol=1e-4), \
        float(jnp.max(jnp.abs(out - ref)))

    # auto-sized single tile: exercises the padded-edge masking path
    out1 = jax.block_until_ready(gat_layer(x, edges, W, a, predict=False))
    assert jnp.allclose(out1, ref, atol=1e-4, rtol=1e-4), \
        float(jnp.max(jnp.abs(out1 - ref)))

    # predict (head-mean) path
    out_p = jax.block_until_ready(gat_layer(x, edges, W, a, predict=True, e_tile=32))
    ref_p = gat_reference(x, edges, W, a, predict=True)
    assert out_p.shape == (N, L)
    assert jnp.allclose(out_p, ref_p, atol=1e-4, rtol=1e-4)

    print("KERNEL_OK")
</pallas_src>

<mosaic_0001>
module attributes {stable_mosaic.version = 11 : i64} {
  func.func @_gat_edge_kernel(%arg0: i32, %arg1: memref<16x27xf32, #tpu.memory_space<vmem>>, %arg2: memref<16x4xf32, #tpu.memory_space<vmem>>, %arg3: memref<3x27xf32, #tpu.memory_space<vmem>>, %arg4: memref<32x16xi8, #tpu.memory_space<vmem>>, %arg5: memref<32x16xi8, #tpu.memory_space<vmem>>, %arg6: memref<16x24xf32, #tpu.memory_space<vmem>>, %arg7: memref<16x27xf32, #tpu.memory_space<vmem>>, %arg8: memref<1x3xf32, #tpu.memory_space<vmem>>) attributes {dimension_semantics = [#tpu.dimension_semantics<arbitrary>], iteration_bounds = array<i64: 2>, scalar_prefetch = 0 : i64, scratch_operands = 2 : i64, tpu.core_type = #tpu.core_type<tc>, window_params = [{pipeline_mode = #tpu.pipeline_mode<synchronous>, transform_indices = @transform_0, window_bounds = array<i64: 16, 27>}, {pipeline_mode = #tpu.pipeline_mode<synchronous>, transform_indices = @transform_1, window_bounds = array<i64: 16, 4>}, {pipeline_mode = #tpu.pipeline_mode<synchronous>, transform_indices = @transform_2, window_bounds = array<i64: 3, 27>}, {transform_indices = @transform_3, window_bounds = array<i64: 32, 16>}, {transform_indices = @transform_4, window_bounds = array<i64: 32, 16>}, {pipeline_mode = #tpu.pipeline_mode<synchronous>, transform_indices = @transform_5, window_bounds = array<i64: 16, 24>}]} {
    %c0_i32 = arith.constant 0 : i32
    %0 = arith.cmpi eq, %arg0, %c0_i32 : i32
    %1 = arith.extui %0 : i1 to i32
    %c0_i32_0 = arith.constant 0 : i32
    %2 = arith.cmpi ne, %1, %c0_i32_0 : i32
    scf.if %2 {
      %cst_31 = arith.constant 0.000000e+00 : f32
      %55 = vector.broadcast %cst_31 : f32 to vector<16x27xf32>
      %c0_32 = arith.constant 0 : index
      %c0_33 = arith.constant 0 : index
      %56 = vector.load %arg7[%c0_32, %c0_33] : memref<16x27xf32, #tpu.memory_space<vmem>>, vector<16x27xf32>
      tpu.vector_store %arg7[%c0_32, %c0_33], %55 {strides = array<i32>} : memref<16x27xf32, #tpu.memory_space<vmem>>, vector<16x27xf32>,
      %cst_34 = arith.constant -1.000000e+30 : f32
      %57 = vector.broadcast %cst_34 : f32 to vector<1x3xf32>
      %c0_35 = arith.constant 0 : index
      %c0_36 = arith.constant 0 : index
      %58 = vector.load %arg8[%c0_35, %c0_36] : memref<1x3xf32, #tpu.memory_space<vmem>>, vector<1x3xf32>
      tpu.vector_store %arg8[%c0_35, %c0_36], %57 {strides = array<i32>} : memref<1x3xf32, #tpu.memory_space<vmem>>, vector<1x3xf32>,
    } else {
    }
    %c0 = arith.constant 0 : index
    %c0_1 = arith.constant 0 : index
    %3 = vector.load %arg3[%c0, %c0_1] : memref<3x27xf32, #tpu.memory_space<vmem>>, vector<3x27xf32>
    %c0_2 = arith.constant 0 : index
    %c0_3 = arith.constant 0 : index
    %4 = vector.load %arg4[%c0_2, %c0_3] : memref<32x16xi8, #tpu.memory_space<vmem>>, vector<32x16xi8>
    %5 = arith.sitofp %4 : vector<32x16xi8> to vector<32x16xf32>
    %c0_4 = arith.constant 0 : index
    %c0_5 = arith.constant 0 : index
    %6 = vector.load %arg5[%c0_4, %c0_5] : memref<32x16xi8, #tpu.memory_space<vmem>>, vector<32x16xi8>
    %7 = arith.sitofp %6 : vector<32x16xi8> to vector<32x16xf32>
    %c0_6 = arith.constant 0 : index
    %c0_7 = arith.constant 0 : index
    %8 = vector.load %arg1[%c0_6, %c0_7] : memref<16x27xf32, #tpu.memory_space<vmem>>, vector<16x27xf32>
    %cst = arith.constant dense<0.000000e+00> : vector<32x27xf32>
    %9 = tpu.matmul %7, %8, %cst {dimension_numbers = #tpu.dot_dimension_numbers<[1], [0], [0], [1], [0, 0, 1, 1], [], []>} : vector<32x16xf32>, vector<16x27xf32>, vector<32x27xf32> -> vector<32x27xf32>
    %c0_8 = arith.constant 0 : index
    %c0_9 = arith.constant 0 : index
    %10 = vector.load %arg2[%c0_8, %c0_9] : memref<16x4xf32, #tpu.memory_space<vmem>>, vector<16x4xf32>
    %cst_10 = arith.constant dense<0.000000e+00> : vector<32x4xf32>
    %11 = tpu.matmul %5, %10, %cst_10 {dimension_numbers = #tpu.dot_dimension_numbers<[1], [0], [0], [1], [0, 0, 1, 1], [], []>} : vector<32x16xf32>, vector<16x4xf32>, vector<32x4xf32> -> vector<32x4xf32>
    %12 = vector.extract_strided_slice %9 {offsets = [0, 24], sizes = [32, 3], strides = [1, 1]} : vector<32x27xf32> to vector<32x3xf32>
    %13 = vector.extract_strided_slice %11 {offsets = [0, 0], sizes = [32, 3], strides = [1, 1]} : vector<32x4xf32> to vector<32x3xf32>
    %14 = vector.extract_strided_slice %11 {offsets = [0, 3], sizes = [32, 1], strides = [1, 1]} : vector<32x4xf32> to vector<32x1xf32>
    %15 = arith.addf %13, %12 : vector<32x3xf32>
    %cst_11 = arith.constant 0.000000e+00 : f32
    %16 = vector.broadcast %cst_11 : f32 to vector<32x3xf32>
    %17 = arith.cmpf oge, %15, %16 : vector<32x3xf32>
    %cst_12 = arith.constant 2.000000e-01 : f32
    %18 = vector.broadcast %cst_12 : f32 to vector<32x3xf32>
    %19 = arith.mulf %18, %15 : vector<32x3xf32>
    %20 = arith.select %17, %15, %19 : vector<32x3xi1>, vector<32x3xf32>
    %cst_13 = arith.constant 5.000000e-01 : f32
    %21 = vector.broadcast %cst_13 : f32 to vector<32x1xf32>
    %22 = arith.cmpf ogt, %14, %21 : vector<32x1xf32>
    %cst_14 = arith.constant -1.000000e+30 : f32
    %23 = vector.shape_cast %22 : vector<32x1xi1> to vector<32x1xi1>
    %24 = vector.broadcast %23 : vector<32x1xi1> to vector<32x3xi1>
    %25 = vector.broadcast %cst_14 : f32 to vector<32x3xf32>
    %26 = arith.select %24, %20, %25 : vector<32x3xi1>, vector<32x3xf32>
    %cst_15 = arith.constant dense<0xFF800000> : vector<3xf32>
    %27 = vector.multi_reduction <maximumf>, %26, %cst_15 [0] : vector<32x3xf32> to vector<3xf32>
    %28 = vector.shape_cast %27 : vector<3xf32> to vector<1x3xf32>
    %c0_16 = arith.constant 0 : index
    %c0_17 = arith.constant 0 : index
    %29 = vector.load %arg8[%c0_16, %c0_17] : memref<1x3xf32, #tpu.memory_space<vmem>>, vector<1x3xf32>
    %30 = arith.maximumf %29, %28 : vector<1x3xf32>
    %c0_18 = arith.constant 0 : index
    %c0_19 = arith.constant 0 : index
    %31 = vector.load %arg8[%c0_18, %c0_19] : memref<1x3xf32, #tpu.memory_space<vmem>>, vector<1x3xf32>
    %32 = arith.subf %31, %30 : vector<1x3xf32>
    %33 = math.exp %32 : vector<1x3xf32>
    %c0_20 = arith.constant 0 : index
    %c0_21 = arith.constant 0 : index
    %34 = vector.load %arg8[%c0_20, %c0_21] : memref<1x3xf32, #tpu.memory_space<vmem>>, vector<1x3xf32>
    tpu.vector_store %arg8[%c0_20, %c0_21], %30 {strides = array<i32>} : memref<1x3xf32, #tpu.memory_space<vmem>>, vector<1x3xf32>,
    %35 = vector.broadcast %30 : vector<1x3xf32> to vector<32x3xf32>
    %36 = arith.subf %26, %35 : vector<32x3xf32>
    %37 = math.exp %36 : vector<32x3xf32>
    %cst_22 = arith.constant dense<0.000000e+00> : vector<32x27xf32>
    %38 = tpu.matmul %37, %3, %cst_22 {dimension_numbers = #tpu.dot_dimension_numbers<[1], [0], [0], [1], [0, 0, 1, 1], [], []>} : vector<32x3xf32>, vector<3x27xf32>, vector<32x27xf32> -> vector<32x27xf32>
    %cst_23 = arith.constant dense<0.000000e+00> : vector<1x27xf32>
    %39 = tpu.matmul %33, %3, %cst_23 {dimension_numbers = #tpu.dot_dimension_numbers<[1], [0], [0], [1], [0, 0, 1, 1], [], []>} : vector<1x3xf32>, vector<3x27xf32>, vector<1x27xf32> -> vector<1x27xf32>
    %40 = tpu.iota {dimensions = array<i32: 1>} : vector<32x27xi32>
    %c24_i32 = arith.constant 24 : i32
    %41 = vector.broadcast %c24_i32 : i32 to vector<32x27xi32>
    %42 = arith.cmpi slt, %40, %41 : vector<32x27xi32>
    %cst_24 = arith.constant 1.000000e+00 : f32
    %43 = vector.broadcast %cst_24 : f32 to vector<32x27xf32>
    %44 = arith.select %42, %9, %43 : vector<32x27xi1>, vector<32x27xf32>
    %45 = arith.mulf %38, %44 : vector<32x27xf32>
    %c0_25 = arith.constant 0 : index
    %c0_26 = arith.constant 0 : index
    %46 = vector.load %arg7[%c0_25, %c0_26] : memref<16x27xf32, #tpu.memory_space<vmem>>, vector<16x27xf32>
    %47 = vector.broadcast %39 : vector<1x27xf32> to vector<16x27xf32>
    %48 = arith.mulf %46, %47 : vector<16x27xf32>
    %cst_27 = arith.constant dense<0.000000e+00> : vector<16x27xf32>
    %49 = tpu.matmul %5, %45, %cst_27 {dimension_numbers = #tpu.dot_dimension_numbers<[0], [0], [1], [1], [0, 1, 1, 1], [], []>} : vector<32x16xf32>, vector<32x27xf32>, vector<16x27xf32> -> vector<16x27xf32>
    %50 = arith.addf %48, %49 : vector<16x27xf32>
    %c0_28 = arith.constant 0 : index
    %c0_29 = arith.constant 0 : index
    %51 = vector.load %arg7[%c0_28, %c0_29] : memref<16x27xf32, #tpu.memory_space<vmem>>, vector<16x27xf32>
    tpu.vector_store %arg7[%c0_28, %c0_29], %50 {strides = array<i32>} : memref<16x27xf32, #tpu.memory_space<vmem>>, vector<16x27xf32>,
    %c1_i32 = arith.constant 1 : i32
    %52 = arith.cmpi eq, %arg0, %c1_i32 : i32
    %53 = arith.extui %52 : i1 to i32
    %c0_i32_30 = arith.constant 0 : i32
    %54 = arith.cmpi ne, %53, %c0_i32_30 : i32
    scf.if %54 {
      %c0_31 = arith.constant 0 : index
      %c0_32 = arith.constant 0 : index
      %55 = vector.load %arg7[%c0_31, %c0_32] : memref<16x27xf32, #tpu.memory_space<vmem>>, vector<16x27xf32>
      %56 = vector.extract_strided_slice %55 {offsets = [0, 0], sizes = [16, 24], strides = [1, 1]} : vector<16x27xf32> to vector<16x24xf32>
      %57 = vector.extract_strided_slice %55 {offsets = [0, 24], sizes = [16, 3], strides = [1, 1]} : vector<16x27xf32> to vector<16x3xf32>
      %58 = vector.extract_strided_slice %3 {offsets = [0, 0], sizes = [3, 24], strides = [1, 1]} : vector<3x27xf32> to vector<3x24xf32>
      %cst_33 = arith.constant dense<0.000000e+00> : vector<16x24xf32>
      %59 = tpu.matmul %57, %58, %cst_33 {dimension_numbers = #tpu.dot_dimension_numbers<[1], [0], [0], [1], [0, 0, 1, 1], [], []>} : vector<16x3xf32>, vector<3x24xf32>, vector<16x24xf32> -> vector<16x24xf32>
      %cst_34 = arith.constant 0.000000e+00 : f32
      %60 = vector.broadcast %cst_34 : f32 to vector<16x24xf32>
      %61 = arith.cmpf ogt, %59, %60 : vector<16x24xf32>
      %cst_35 = arith.constant 1.000000e+00 : f32
      %62 = vector.broadcast %cst_35 : f32 to vector<16x24xf32>
      %63 = arith.select %61, %59, %62 : vector<16x24xi1>, vector<16x24xf32>
      %64 = arith.divf %56, %63 : vector<16x24xf32>
      %c0_36 = arith.constant 0 : index
      %c0_37 = arith.constant 0 : index
      %65 = vector.load %arg6[%c0_36, %c0_37] : memref<16x24xf32, #tpu.memory_space<vmem>>, vector<16x24xf32>
      tpu.vector_store %arg6[%c0_36, %c0_37], %64 {strides = array<i32>} : memref<16x24xf32, #tpu.memory_space<vmem>>, vector<16x24xf32>,
    } else {
    }
    return
  }
  func.func @transform_0(%arg0: i32) -> (i32, i32) {
    %c0_i32 = arith.constant 0 : i32
    %c0_i32_0 = arith.constant 0 : i32
    %c0_i32_1 = arith.constant 0 : i32
    return %c0_i32, %c0_i32_0 : i32, i32
  }
  func.func @transform_1(%arg0: i32) -> (i32, i32) {
    %c0_i32 = arith.constant 0 : i32
    %c0_i32_0 = arith.constant 0 : i32
    %c0_i32_1 = arith.constant 0 : i32
    return %c0_i32, %c0_i32_0 : i32, i32
  }
  func.func @transform_2(%arg0: i32) -> (i32, i32) {
    %c0_i32 = arith.constant 0 : i32
    %c0_i32_0 = arith.constant 0 : i32
    %c0_i32_1 = arith.constant 0 : i32
    return %c0_i32, %c0_i32_0 : i32, i32
  }
  func.func @transform_3(%arg0: i32) -> (i32, i32) {
    %c0_i32 = arith.constant 0 : i32
    %c0_i32_0 = arith.constant 0 : i32
    return %arg0, %c0_i32 : i32, i32
  }
  func.func @transform_4(%arg0: i32) -> (i32, i32) {
    %c0_i32 = arith.constant 0 : i32
    %c0_i32_0 = arith.constant 0 : i32
    return %arg0, %c0_i32 : i32, i32
  }
  func.func @transform_5(%arg0: i32) -> (i32, i32) {
    %c0_i32 = arith.constant 0 : i32
    %c0_i32_0 = arith.constant 0 : i32
    %c0_i32_1 = arith.constant 0 : i32
    return %c0_i32, %c0_i32_0 : i32, i32
  }
}

</mosaic_0001>

<bundles_post_ra>
// kernel: tpu_custom_call.1
= control target key start
LH: loop header
LB: loop body
LE: loop exit
PB: predicated region body
PF: predicated region fallthrough
CT: control target
= control target key end

     0   :  { %10 = vsyncpa [#allocation5], 0  ;;  %s1272_s18 = smov 0   ;;  %s1385_s0 = inlined_call_operand.vmem [shape: f32[16,27], index: 0, kind: input, shape index: {}]   ;;  %s1386_s1 = inlined_call_operand.vmem [shape: f32[16,4], index: 1, kind: input, shape index: {}]   ;;  %s1387_s2 = inlined_call_operand.vmem [shape: f32[3,27], index: 2, kind: input, shape index: {}]   ;;  %s1388_s3 = inlined_call_operand.vmem [shape: s8[64,16], index: 3, kind: input, shape index: {}]   ;;  %s1389_s4 = inlined_call_operand.vmem [shape: s8[64,16], index: 4, kind: input, shape index: {}]   ;;  %s1390_s5 = inlined_call_operand.hbm [shape: f32[16,24], index: 5, kind: output, shape index: {}]  }
   0x1 LB: > { %s1278_s19 = sadd.s32 4294967295, %s1229_s18   ;;  %p1028_p0 = scmp.ge.s32.totalorder %s1229_s18, 1  ;;  %s1229_s18 = sphi %s1272_s18, %s16_s18  }
   0x2   : > { %p191_p1 = scmp.lt.s32.totalorder %s1229_s18, 3 }
   0x4   : > { %p192_p2 = pnand %p1028_p0, %p191_p1 }
   0x5   : > { %p217_p3 = scmp.lt.s32.totalorder (!%p192_p2), %s1278_s19, 1  ;;  %p1031_p4 = scmp.ne.s32.totalorder (!%p192_p2), %s1278_s19, 0 }
   0x6   : > { %195 = sbr.rel (%p192_p2) target bundleno = 1251 (0x4e3), region = 40 }
   0xd   : > { %s218_s20 = scalar_select %p217_p3, %s1278_s19, 1 }
   0xe   : > { %228 = sbr.rel (%p1031_p4) target bundleno = 21 (0x15), region = 44  ;;  %vm229_vm0 = vcmask (!%p1031_p4), 220160   ;;  %vm232_vm1 = vcmask (!%p1031_p4), 16384   ;;  %v1231_v0 = vmov (!%p1031_p4), 0.0   ;;  %v1232_v1 = vmov (!%p1031_p4), -1e+30  }
   0xf   : > { %s1029_s21 = sshll.u32 %s218_s20, 3  ;;  %230 = vst.msk [vmem:[#allocation2] sm:$0xff] (!%p1031_p4), %vm229_vm0, %v1231_v0  ;;  %231 = vst.msk [vmem:[#allocation2 + $0x8] sm:$0xff] (!%p1031_p4), %vm229_vm0, %v1231_v0 }
  0x10   : > { %s220_s24 = scalar_lea.vmem %s1388_s3, %s1029_s21  ;;  %s224_s27 = scalar_lea.vmem %s1389_s4, %s1029_s21  ;;  %233 = vst.msk [vmem:[#allocation3] sm:$0x1] (!%p1031_p4), %vm232_vm1, %v1232_v1 }
  0x15 PF: > { %v253_v2 = vld [vmem:[%s1385_s0] sm:$0xff]  ;;  %v254_v3 = vld [vmem:[%s1385_s0 + $0x8] sm:$0xff]  ;;  %vm255_vm2 = vcmask 130048   ;;  %v1233_v26 = vmov 3   ;;  %s1234_s11 = smov 104   ;;  %v1235_v33 = vmov 0  }
  0x16   : > { %v244_v4 = vld [vmem:[%s224_s27] sm:$0xff]  ;;  %v1134_v5 = vpack.c.bf16 %v254_v3, %v253_v2  ;;  %v354_v10 = vld [vmem:[%s1386_s1 + $0x8] sm:$0xff]  ;;  %1177 = vset.pattern.permute.xlu0 %v1233_v26  ;;  %1178 = vset.pattern.permute.xlu1 %v1233_v26  ;;  %vm563_vm7 = vcmask 1042432   ;;  %v1236_v41 = vmov 0.0   ;;  %vm1237_vm8 = vmmov 0   ;;  %p1049_p5 = scmp.ne.s32.totalorder %s1278_s19, 1 }
  0x17   : > { %v245_v6 = vunpack.c.0.s8 %v244_v4  ;;  %v247_v7 = vunpack.c.2.s8 %v244_v4  ;;  %v246_v8 = vunpack.c.1.s8 %v244_v4  ;;  %v353_v9 = vld [vmem:[%s1386_s1] sm:$0xff]  ;;  %v248_v12 = vunpack.c.3.s8 %v244_v4  ;;  %s1238_s14 = smov (!%p1049_p5), 104  }
  0x18   : > { %v235_v11 = vld [vmem:[%s220_s24] sm:$0xff]  ;;  %v1138_v13 = vpack.c.bf16 %v354_v10, %v353_v9  ;;  %1135 = vmatprep.subr.bf16.mxu0 %v1134_v5  ;;  %1150 = vmatprep.subr.bf16.mxu1 %v1134_v5  ;;  %vm512_vm12 = vcmask 23552  }
  0x19   : > { %v236_v14 = vunpack.c.0.s8 %v235_v11  ;;  %v249_v15 = vcvt.s32.f32 %v245_v6  ;;  %v251_v16 = vcvt.s32.f32 %v247_v7  ;;  %v250_v17 = vcvt.s32.f32 %v246_v8  ;;  %1137 = vmatpush3.bf16.msra.mxu0 %v1134_v5  ;;  %1151 = vmatpush3.bf16.msra.mxu1 %v1134_v5  ;;  %v1326_v40 = vld [vmem:[%s1387_s2] sm:$0x7] }
  0x1a   : > { %v237_v18 = vunpack.c.1.s8 %v235_v11  ;;  %v252_v19 = vcvt.s32.f32 %v248_v12  ;;  %v238_v21 = vunpack.c.2.s8 %v235_v11  ;;  %1139 = vmatprep.subr.bf16.mxu1 %v1138_v13  ;;  %v239_v23 = vunpack.c.3.s8 %v235_v11  ;;  %1105 = vmatprep.subr.msk.mxu0 %vm563_vm7, %v1326_v40 }
  0x1b   : > { %v240_v20 = vcvt.s32.f32 %v236_v14  ;;  %1089 = vmatprep.mubr.msk.f32.mxu0 %vm255_vm2, %v249_v15  ;;  %1092 = vmatprep.mubr.msk.f32.mxu1 %vm255_vm2, %v251_v16  ;;  %v534_v11 = vlaneseq  ;;  %v526_v16 = vld [vmem:[#allocation3] sm:$0x1] }
  0x1c   : > { %1090 = vmatmul.mubr.msk.f32.vlgmr.msra.gmra.mrb[0].mxu0 %vm255_vm2, %v250_v17  ;;  %1093 = vmatmul.mubr.msk.f32.vlgmr.msra.gmra.mrb[0].mxu1 %vm255_vm2, %v252_v19  ;;  %v241_v22 = vcvt.s32.f32 %v237_v18  ;;  %v242_v24 = vcvt.s32.f32 %v238_v21  ;;  %v243_v25 = vcvt.s32.f32 %v239_v23 }
  0x1d   : > { %1141 = vmatpush3.bf16.msra.mxu1 %v1138_v13  ;;  %1099 = vmatprep.mubr.msk.f32.mxu1 %vm255_vm2, %v240_v20  ;;  %v1338_v13 = vshrl.u32 %v534_v11, 7 }
  0x1e   : > { %1113 = vmatprep.subr.mxu1 %v1236_v41  ;;  %1106 = vmatpush3.msk.msra.mxu0 %vm563_vm7, %v1326_v40 }
  0x1f   : > { %v536_v17 = vsub.s32 0, %v1338_v13 }
  0x20   : > { %1100 = vmatmul.mubr.msk.f32.vlgmr.msra.gmra.mrb[2].mxu1 %vm255_vm2, %v241_v22 }
  0x21   : > { %1102 = vmatprep.mubr.msk.f32.mxu1 %vm255_vm2, %v242_v24  ;;  %1114 = vmatpush3.msk.msra.mxu1 %vm563_vm7, %v1326_v40 }
  0x24   : > { %1103 = vmatmul.mubr.msk.f32.gmra.mrb[4].mxu1 %vm255_vm2, %v243_v25  ;;  %vm531_vm2 = vcmask 16384  }
  0x25   : > { %1115 = vmatprep.mubr.msk.f32.mxu1 %vm1237_vm8, %v1236_v41 }
  0xef   : > { %v1311_v27 = vpop.f32.mrb[0].mxu0  ;;  %v1313_v28 = vpop.f32.mrb[0].mxu1 }
  0xf0   : > { %v1315_v29 = vpop.f32.mrb[1].mxu1  ;;  %458 = vrot.lane.b32.xlu1 %v1311_v27, %s1234_s11  ;;  %v1318_v30 = vpop.f32.mrb[1].mxu0 }
  0xf1   : > { %456 = vrot.lane.b32.xlu0 %v1318_v30, %s1234_s11 }
  0xf3   : > { %v1101_v31 = vpop.f32.mrb[2].mxu1 }
  0xf4   : > { %vm485_vm3 = vcmp.gt.f32.partialorder %v1101_v31, 0.5  ;;  %v433_v32 = vpop.f32.mrb[3].mxu1 }
  0xf5   : > { %v489_v34 = vsel %vm485_vm3, 1, %v1235_v33  ;;  %vm484_vm4 = vcmp.gt.f32.partialorder %v433_v32, 0.5  ;;  %vm776_vm3 = vcmask 261120  }
  0xf6   : > { %496 = vperm.xlu0 %1177, %v489_v34   ;;  %v488_v37 = vsel %vm484_vm4, 1, %v1235_v33 }
  0xf7   : > { %v1104_v35 = vpop.f32.mrb[4].mxu1 }
  0xf8   : > { %vm487_vm5 = vcmp.gt.f32.partialorder %v1104_v35, 0.5  ;;  %v443_v36 = vpop.f32.mrb[5].mxu1 }
  0xf9   : > { %v491_v38 = vsel %vm487_vm5, 1, %v1235_v33  ;;  %vm486_vm6 = vcmp.gt.f32.partialorder %v443_v36, 0.5  ;;  %vm860_vm5 = vcmask 220160  }
  0xfa   : > { %493 = vperm.xlu0 %1177, %v488_v37   ;;  %502 = vperm.xlu1 %1178, %v491_v38   ;;  %v490_v39 = vsel %vm486_vm6, 1, %v1235_v33 }
  0xfe   : > { %460 = vrot.lane.b32.xlu0 %v1315_v29, %s1234_s11  ;;  %499 = vperm.xlu1 %1178, %v490_v39  }
 0x102   : > { %462 = vrot.lane.b32.xlu1 %v1313_v28, %s1234_s11 }
 0x11c   : > { %744 = vxpose.xlu0.b32.start [1/4] (short) (narrow) %v240_v20, 16 }
 0x120   : > { %745 = vxpose.xlu0.b32.cont [2/4] (short) (narrow) %v241_v22, 16 }
 0x124   : > { %746 = vxpose.xlu0.b32.cont [3/4] (short) (narrow) %v242_v24, 16 }
 0x128   : > { %747 = vxpose.xlu0.b32.end [4/4] (short) (narrow) %v243_v25, 16 }
 0x162   : > { %v459_v42 = vpop.permute.xlu1 %458 }
 0x163   : > { %v457_v43 = vpop.permute.xlu0 %456  ;;  %v469_v44 = vadd.f32 %v1101_v31, %v459_v42  ;;  %v726_v42 = vand.u32 127, %v534_v11 }
 0x164   : > { %v468_v45 = vadd.f32 %v457_v43, %v433_v32 }
 0x165   : > { %v477_v46 = vmul.f32 0.2, %v469_v44  ;;  %vm473_vm9 = vcmp.ge.f32.partialorder %v469_v44, 0.0  ;;  %vm727_vm4 = vcmp.lt.s32.totalorder %v726_v42, 24 }
 0x166   : > { %v476_v48 = vmul.f32 0.2, %v468_v45  ;;  %vm472_vm11 = vcmp.ge.f32.partialorder %v468_v45, 0.0 }
 0x167   : > { %v481_v49 = vsel %vm473_vm9, %v469_v44, %v477_v46  ;;  %v729_v46 = vsel %vm727_vm4, %v1311_v27, 1.0  ;;  %vm962_vm9 = vcmask (!%p1049_p5), 195584  }
 0x168   : > { %v480_v53 = vsel %vm472_vm11, %v468_v45, %v476_v48 }
 0x175   : > { %v497_v47 = vpop.permute.xlu0 %496 }
 0x176   : > { %vm505_vm10 = vcmp.eq.s32.totalorder %v497_v47, 1 }
 0x177   : > { %v509_v50 = vsel %vm505_vm10, %v481_v49, -1e+30  ;;  %v728_v49 = vsel %vm727_vm4, %v1318_v30, 1.0  ;;  %v737_v30 = vld [vmem:[#allocation2 + $0x8] sm:$0xff] }
 0x178   : > { %v514_v55 = vsel %vm512_vm12, %v509_v50, -inf }
 0x179   : > { %v494_v51 = vpop.permute.xlu0 %493  ;;  %v503_v52 = vpop.permute.xlu1 %502 }
 0x17a   : > { %vm504_vm13 = vcmp.eq.s32.totalorder %v494_v51, 1  ;;  %vm507_vm1 = vcmp.eq.s32.totalorder %v503_v52, 1 }
 0x17b   : > { %v508_v54 = vsel %vm504_vm13, %v480_v53, -1e+30  ;;  %v731_v53 = vsel %vm727_vm4, %v1313_v28, 1.0 }
 0x17c   : > { %v513_v56 = vsel %vm512_vm12, %v508_v54, -inf }
 0x17d   : > { %v517_v57 = vmax.f32 %v513_v56, %v514_v55  ;;  %v461_v58 = vpop.permute.xlu0 %460  ;;  %v500_v59 = vpop.permute.xlu1 %499  ;;  %v730_v56 = vsel %vm727_vm4, %v1315_v29, 1.0 }
 0x17e   : > { %v470_v60 = vadd.f32 %v461_v58, %v443_v36  ;;  %vm506_vm15 = vcmp.eq.s32.totalorder %v500_v59, 1 }
 0x180   : > { %v478_v61 = vmul.f32 0.2, %v470_v60  ;;  %vm474_vm14 = vcmp.ge.f32.partialorder %v470_v60, 0.0 }
 0x181   : > { %v463_v62 = vpop.permute.xlu1 %462 }
 0x182   : > { %v482_v63 = vsel %vm474_vm14, %v470_v60, %v478_v61  ;;  %v471_v0 = vadd.f32 %v1104_v35, %v463_v62  ;;  %v736_v60 = vld [vmem:[#allocation2] sm:$0xff] }
 0x183   : > { %v510_v2 = vsel %vm506_vm15, %v482_v63, -1e+30 }
 0x184   : > { %vm475_vm0 = vcmp.ge.f32.partialorder %v471_v0, 0.0  ;;  %v479_v1 = vmul.f32 0.2, %v471_v0  ;;  %v515_v5 = vsel %vm512_vm12, %v510_v2, -inf }
 0x186   : > { %v483_v3 = vsel %vm475_vm0, %v471_v0, %v479_v1 }
 0x187   : > { %v511_v4 = vsel %vm507_vm1, %v483_v3, -1e+30 }
 0x188   : > { %v516_v6 = vsel %vm512_vm12, %v511_v4, -inf }
 0x189   : > { %v518_v7 = vmax.f32 %v515_v5, %v516_v6 }
 0x18b   : > { %v519_v8 = vmax.f32 %v517_v57, %v518_v7 }
 0x18d   : > { %v520_v9 = vrot.slane %v519_v8, 4 }
 0x18f   : > { %v521_v10 = vmax.f32 %v519_v8, %v520_v9 }
 0x191   : > { %v522_v12 = vrot.slane %v521_v10, 2 }
 0x193   : > { %v523_v14 = vmax.f32 %v521_v10, %v522_v12 }
 0x195   : > { %v524_v15 = vrot.slane %v523_v14, 1 }
 0x197   : > { %v525_v18 = vmax.f32 %v523_v14, %v524_v15 }
 0x199   : > { %v527_v19 = vmax.f32 %v526_v16, %v525_v18 }
 0x19b   : > { %v528_v20 = vsub.f32 %v526_v16, %v527_v19  ;;  %532 = vst.msk [vmem:[#allocation3] sm:$0x1] %vm531_vm2, %v527_v19  ;;  %v537_v21 = vrot.slane %v527_v19, %v536_v17 }
 0x19c   : > { %v760_v41 = vpop.trf.xlu0 }
 0x19d   : > { %v529_v22 = vmul.f32 1.442695, %v528_v20  ;;  %v539_v23 = vsub.f32 %v508_v54, %v537_v21  ;;  %v540_v24 = vsub.f32 %v509_v50, %v537_v21  ;;  %v541_v25 = vsub.f32 %v510_v2, %v537_v21 }
 0x19e   : > { %v542_v26 = vsub.f32 %v511_v4, %v537_v21 }
 0x19f   : > { %1179 = vpow2.f32 %v529_v22  ;;  %v543_v31 = vmul.f32 1.442695, %v539_v23  ;;  %v545_v32 = vmul.f32 1.442695, %v540_v24  ;;  %v547_v33 = vmul.f32 1.442695, %v541_v25 }
 0x1a0   : > { %v549_v34 = vmul.f32 1.442695, %v542_v26  ;;  %v761_v27 = vpop.trf.xlu0 }
 0x1a1   : > { %1181 = vpow2.f32 %v543_v31 }
 0x1a2   : > { %1183 = vpow2.f32 %v545_v32 }
 0x1a3   : > { %1185 = vpow2.f32 %v547_v33 }
 0x1a4   : > { %1187 = vpow2.f32 %v549_v34 }
 0x1a9   : > { %v1180_v35 = vpop.eup %1179 }
 0x1aa   : > { %1116 = vmatmul.mubr.msk.f32.vlgmr.msra.gmra.mrb[6].mxu1 %vm512_vm12, %v1180_v35 }
 0x1ab   : > { %v1182_v36 = vpop.eup %1181 }
 0x1ac   : > { %v1184_v37 = vpop.eup %1183  ;;  %1107 = vmatprep.mubr.msk.f32.mxu0 %vm512_vm12, %v1182_v36 }
 0x1ad   : > { %v1186_v38 = vpop.eup %1185  ;;  %1108 = vmatmul.mubr.msk.f32.vlgmr.msra.gmra.mrb[2].mxu0 %vm512_vm12, %v1184_v37 }
 0x1ae   : > { %1110 = vmatprep.mubr.msk.f32.mxu0 %vm512_vm12, %v1186_v38  ;;  %v1188_v39 = vpop.eup %1187 }
 0x1b1   : > { %1111 = vmatmul.mubr.msk.f32.gmra.mrb[4].mxu0 %vm512_vm12, %v1188_v39 }
 0x1b2   : > { %1126 = vmatprep.mubr.msk.f32.mxu0 %vm776_vm3, %v760_v41 }
 0x27d   : > { %v721_v43 = vpop.f32.mrb[6].mxu1 }
 0x27e   : > { %v1117_v44 = vpop.f32.mrb[7].mxu1  ;;  %v741_v59 = vrot.slane %v721_v43, %v536_v17 }
 0x280   : > { %v1109_v45 = vpop.f32.mrb[2].mxu0  ;;  %v743_v61 = vmul.f32 %v741_v59, %v737_v30  ;;  %v742_v28 = vmul.f32 %v741_v59, %v736_v60 }
 0x281   : > { %v733_v47 = vmul.f32 %v1109_v45, %v729_v46  ;;  %v633_v48 = vpop.f32.mrb[3].mxu0 }
 0x282   : > { %v732_v50 = vmul.f32 %v728_v49, %v633_v48 }
 0x284   : > { %v1142_v51 = vpack.c.bf16 %v733_v47, %v732_v50  ;;  %v1112_v52 = vpop.f32.mrb[4].mxu0 }
 0x285   : > { %v735_v54 = vmul.f32 %v1112_v52, %v731_v53  ;;  %v643_v55 = vpop.f32.mrb[5].mxu0 }
 0x286   : > { %v734_v57 = vmul.f32 %v730_v56, %v643_v55  ;;  %1143 = vmatprep.subr.bf16.mxu0 %v1142_v51 }
 0x287   : > { %1145 = vmatpush3.bf16.msra.mxu0 %v1142_v51 }
 0x288   : > { %v1146_v58 = vpack.c.bf16 %v735_v54, %v734_v57 }
 0x28a   : > { %1147 = vmatprep.subr.bf16.mxu0 %v1146_v58 }
 0x28b   : > { %1149 = vmatpush3.bf16.msra.mxu0 %v1146_v58 }
 0x28c   : > { %1129 = vmatprep.subr.msk.mxu0 (!%p1049_p5), %vm563_vm7, %v1326_v40 }
 0x28e   : > { %1127 = vmatmul.mubr.msk.f32.vlgmr.msra.gmra.mrb[6].mxu0 %vm776_vm3, %v761_v27 }
 0x28f   : > { %1130 = vmatpush3.msk.msra.mxu0 (!%p1049_p5), %vm563_vm7, %v1326_v40 }
 0x35f   : > { %866 = sbr.rel (%p1049_p5) target bundleno = 1225 (0x4c9), region = 48 }
 0x361   : > { %v1128_v62 = vpop.f32.mrb[6].mxu0 }
 0x362   : > { %v859_v63 = vadd.f32 %v1128_v62, %v743_v61  ;;  %v849_v0 = vpop.f32.mrb[7].mxu0 }
 0x363   : > { %v858_v1 = vadd.f32 %v849_v0, %v742_v28 }
 0x364   : > { %862 = vst.msk [vmem:[#allocation2 + $0x8] sm:$0xff] %vm860_vm5, %v859_v63 }
 0x365   : > { %861 = vst.msk [vmem:[#allocation2] sm:$0xff] %vm860_vm5, %v858_v1 }
 0x36b   : > { %v868_v2 = vld [vmem:[#allocation2 + $0x8] sm:$0xff] }
 0x36c   : > { %v867_v29 = vld [vmem:[#allocation2] sm:$0xff] }
 0x36d   : > { %871 = vrot.lane.b32.xlu0 %v867_v29, %s1238_s14 }
 0x371   : > { %873 = vrot.lane.b32.xlu0 %v868_v2, %s1238_s14 }
 0x3df   : > { %v872_v3 = vpop.permute.xlu0 %871 }
 0x3e0   : > { %1131 = vmatprep.mubr.msk.f32.mxu0 %vm512_vm12, %v872_v3 }
 0x3e3   : > { %v874_v4 = vpop.permute.xlu0 %873 }
 0x3e4   : > { %1132 = vmatmul.mubr.msk.f32.vlgmr.msra.gmra.mrb[0].mxu0 %vm512_vm12, %v874_v4 }
 0x4b7   : > { %v1133_v5 = vpop.f32.mrb[0].mxu0 }
 0x4b8   : > { %vm955_vm6 = vcmp.gt.f32.partialorder %v1133_v5, 0.0  ;;  %v945_v6 = vpop.f32.mrb[1].mxu0 }
 0x4b9   : > { %v957_v7 = vsel %vm955_vm6, %v1133_v5, 1.0  ;;  %vm954_vm8 = vcmp.gt.f32.partialorder %v945_v6, 0.0 }
 0x4ba   : > { %1189 = vrcp.f32 %v957_v7  ;;  %v956_v8 = vsel %vm954_vm8, %v945_v6, 1.0 }
 0x4bb   : > { %1191 = vrcp.f32 %v956_v8 }
 0x4c4   : > { %v1190_v9 = vpop.eup %1189 }
 0x4c5   : > { %v1192_v10 = vpop.eup %1191  ;;  %v961_v40 = vmul.f32 %v1190_v9, %v868_v2 }
 0x4c6   : > { %v959_v11 = vmul.f32 %v1192_v10, %v867_v29 }
 0x4c7   : > { %964 = vst.msk [vmem:[#allocation4 + $0x8] sm:$0xff] %vm962_vm9, %v961_v40 }
 0x4c8   : > { %963 = vst.msk [vmem:[#allocation4] sm:$0xff] %vm962_vm9, %v959_v11 }
 0x4c9 PF: > { %p1156_p6 = scmp.eq.s32.totalorder %s1278_s19, 1  ;;  %s1239_s15 = smov [#allocation4]  }
 0x4ca   : > { %s971_s16 = sshll.u32 %s1239_s15, 4  ;;  %s972_s16 = int_to_ptr.vmem [resolvable:$true] %s971_s16 }
 0x4cb   : > { %s1193_s17 = scalar_lea.vmem %s972_s16, 256  ;;  %p1200_p10 = scmp.lt.s32.totalorder %s972_s16, %s972_s16 }
 0x4cc   : > { %p1194_p7 = scmp.ne.s32.totalorder %s972_s16, %s1193_s17  ;;  %p1201_p11 = scmp.lt.s32.totalorder %s1193_s17, %s1193_s17 }
 0x4ce   : > { %p1195_p8 = pnand %p1194_p7, %p1156_p6  ;;  %p1202_p12 = por %p1201_p11, %p1200_p10 }
 0x4d0   : > { %p1196_p9 = pneg %p1195_p8 }
 0x4d2   : > { %p1203_p13 = pnand %p1202_p12, %p1196_p9 }
 0x4d4   : > { %1206 = shalt.err (!%p1203_p13)
}
 0x4d5   : > { %s1207_s22 = scalar_lea.hbm %s1390_s5, 256 }
 0x4d6   : > { %p1208_p0 = scmp.ne.s32.totalorder %s1390_s5, %s1207_s22  ;;  %p1213_p3 = scmp.lt.u32.totalorder %s1207_s22, %s1390_s5 }
 0x4d8   : > { %p1209_p1 = pnand %p1208_p0, %p1156_p6 }
 0x4da   : > { %p1210_p2 = pneg %p1209_p1 }
 0x4dc   : > { %p1215_p4 = pnand %p1213_p3, %p1210_p2 }
 0x4de   : > { %1218 = shalt.err (!%p1215_p4)
}
 0x4df   : > { %s1240_s27 = smov 128   ;;  %s1241_s28 = smov 8  }
 0x4e0   : > { %1153 = dma.vmem_to_hbm [thread:$0]  (%p1156_p6), %s972_s16, 256, %s1390_s5, [#allocation5], %s1240_s27, %s1240_s27, %s1241_s28  }
 0x4e1   : > { %1224 = dma.done.wait (%p1156_p6), [#allocation5], 256  }
 0x4e2   : > { %1226 = vsyncadd (%p1156_p6), [#allocation5], 4294967040 }
 0x4e3 PF: > { %s16_s18 = sadd.s32 1, %s1229_s18  }
 0x4e4   : > { %p13_p5 = scmp.ge.s32.totalorder %s16_s18, 4  }
 0x4e6   :  { %15 = sbr.rel (!%p13_p5) target bundleno = 1 (0x1), region = 78 }
 0x4ed   :  { %987 = vsyncpa [#allocation5], 1 }
 0x4ee   :  { %989 = vsyncpa [#allocation5 + $0x1], 1 }

</bundles_post_ra>
